<compile_context>
chip_gen: v6e
topology: v6e:2x2x1
jax: 0.10.0
libtpu: 0.0.40
codegen_flags: <defaults>
</compile_context>

<pallas_src>
import functools
import math

import jax
import jax.numpy as jnp
from jax import lax
from jax.experimental import pallas as pl
from jax.experimental.pallas import tpu as pltpu

NEG_INF = float("-inf")
MASK_BIAS = -1e30  # finite large-negative additive bias (avoids NaN on all-masked rows)


# ----------------------------------------------------------------------------
# Kernel 1: fused Q/K/V projections    y = x @ W_t + b   (W_t pre-transposed)
# ----------------------------------------------------------------------------
def _qkv_proj_kernel(q_ref, k_ref, v_ref, wq_ref, wk_ref, wv_ref, b_ref,
                     qo_ref, ko_ref, vo_ref):
    b = b_ref[...]                                   # (3, E) f32: [bq; bk; bv]
    qo_ref[0] = (jnp.dot(q_ref[0], wq_ref[...],
                         preferred_element_type=jnp.float32)
                 + b[0:1, :]).astype(qo_ref.dtype)
    ko_ref[0] = (jnp.dot(k_ref[0], wk_ref[...],
                         preferred_element_type=jnp.float32)
                 + b[1:2, :]).astype(ko_ref.dtype)
    vo_ref[0] = (jnp.dot(v_ref[0], wv_ref[...],
                         preferred_element_type=jnp.float32)
                 + b[2:3, :]).astype(vo_ref.dtype)


def fused_qkv_proj(q, k, v, wq_t, wk_t, wv_t, b_qkv, out_dtype):
    """q:(B,Sq,E), k/v:(B,Skv,E), w*_t:(E,E) pre-transposed, b_qkv:(3,E)."""
    B, Sq, E = q.shape
    Skv = k.shape[1]
    return pl.pallas_call(
        _qkv_proj_kernel,
        out_shape=(jax.ShapeDtypeStruct((B, Sq, E), out_dtype),
                   jax.ShapeDtypeStruct((B, Skv, E), out_dtype),
                   jax.ShapeDtypeStruct((B, Skv, E), out_dtype)),
        grid_spec=pltpu.PrefetchScalarGridSpec(
            num_scalar_prefetch=0,
            grid=(B,),
            in_specs=[
                pl.BlockSpec((1, Sq, E), lambda b: (b, 0, 0)),
                pl.BlockSpec((1, Skv, E), lambda b: (b, 0, 0)),
                pl.BlockSpec((1, Skv, E), lambda b: (b, 0, 0)),
                pl.BlockSpec((E, E), lambda b: (0, 0)),
                pl.BlockSpec((E, E), lambda b: (0, 0)),
                pl.BlockSpec((E, E), lambda b: (0, 0)),
                pl.BlockSpec((3, E), lambda b: (0, 0)),
            ],
            out_specs=[
                pl.BlockSpec((1, Sq, E), lambda b: (b, 0, 0)),
                pl.BlockSpec((1, Skv, E), lambda b: (b, 0, 0)),
                pl.BlockSpec((1, Skv, E), lambda b: (b, 0, 0)),
            ],
        ),
        compiler_params=pltpu.CompilerParams(dimension_semantics=("parallel",)),
    )(q, k, v, wq_t, wk_t, wv_t, b_qkv)


# ----------------------------------------------------------------------------
# Kernel 2: scaled dot-product attention, one batch (all heads) per grid step
# ----------------------------------------------------------------------------
def _sdpa_kernel(q_ref, k_ref, v_ref, bias_ref, o_ref, *, scale):
    q = q_ref[0]                                     # (H, Sq, D)
    k = k_ref[0]                                     # (H, Skv, D)
    v = v_ref[0]                                     # (H, Skv, D)

    # fold 1/sqrt(d_k) into q (Sq*D multiplies instead of Sq*Skv divides)
    q = q * jnp.asarray(scale, dtype=q.dtype)

    # QK^T via dot_general contracting last dims — no in-kernel k transpose
    s = lax.dot_general(q, k, (((2,), (2,)), ((0,), (0,))),
                        preferred_element_type=jnp.float32)   # (H, Sq, Skv) f32

    # additive mask bias (precomputed in wrapper): single VPU add per element
    s = s + bias_ref[0]                              # (1, Skv) broadcasts

    # numerically-stable softmax in f32; denominator via EUP approx reciprocal
    m = jnp.max(s, axis=-1, keepdims=True)
    p = jnp.exp(s - m)
    p = p * pl.reciprocal(jnp.sum(p, axis=-1, keepdims=True), approx=True)
    # TODO(synk): nn.Dropout(p=0.1) omitted — eval-mode (identity) semantics.

    # cast probabilities to V dtype before the PV matmul (halves MXU operand BW)
    o = lax.dot_general(p.astype(v.dtype), v, (((2,), (1,)), ((0,), (0,))),
                        preferred_element_type=jnp.float32)   # (H, Sq, D) f32
    o_ref[0] = o.astype(o_ref.dtype)


def pallas_sdpa(qh, kh, vh, mask_bias, out_dtype):
    """qh:(B,H,Sq,D), kh/vh:(B,H,Skv,D), mask_bias:(B,1,Skv) -> (B,H,Sq,D)."""
    B, H, Sq, D = qh.shape
    Skv = kh.shape[2]
    kernel = functools.partial(_sdpa_kernel, scale=1.0 / math.sqrt(D))
    return pl.pallas_call(
        kernel,
        out_shape=jax.ShapeDtypeStruct((B, H, Sq, D), out_dtype),
        grid_spec=pltpu.PrefetchScalarGridSpec(
            num_scalar_prefetch=0,
            grid=(B,),
            in_specs=[
                pl.BlockSpec((1, H, Sq, D), lambda b: (b, 0, 0, 0)),
                pl.BlockSpec((1, H, Skv, D), lambda b: (b, 0, 0, 0)),
                pl.BlockSpec((1, H, Skv, D), lambda b: (b, 0, 0, 0)),
                pl.BlockSpec((1, 1, Skv), lambda b: (b, 0, 0)),
            ],
            out_specs=pl.BlockSpec((1, H, Sq, D), lambda b: (b, 0, 0, 0)),
        ),
        compiler_params=pltpu.CompilerParams(dimension_semantics=("parallel",)),
    )(qh, kh, vh, mask_bias)


# ----------------------------------------------------------------------------
# Kernel 3: output projection    y = x @ Wp_t + bp
# ----------------------------------------------------------------------------
def _out_proj_kernel(x_ref, w_ref, b_ref, o_ref):
    o_ref[0] = (jnp.dot(x_ref[0], w_ref[...], preferred_element_type=jnp.float32)
                + b_ref[...]).astype(o_ref.dtype)


def pallas_out_proj(x, wp_t, bp):
    B, S, E = x.shape
    Eo = wp_t.shape[1]
    return pl.pallas_call(
        _out_proj_kernel,
        out_shape=jax.ShapeDtypeStruct((B, S, Eo), jnp.float32),
        grid_spec=pltpu.PrefetchScalarGridSpec(
            num_scalar_prefetch=0,
            grid=(B,),
            in_specs=[
                pl.BlockSpec((1, S, E), lambda b: (b, 0, 0)),
                pl.BlockSpec((E, Eo), lambda b: (0, 0)),
                pl.BlockSpec((1, Eo), lambda b: (0, 0)),
            ],
            out_specs=pl.BlockSpec((1, S, Eo), lambda b: (b, 0, 0)),
        ),
        compiler_params=pltpu.CompilerParams(dimension_semantics=("parallel",)),
    )(x, wp_t, bp.reshape(1, Eo))


# ----------------------------------------------------------------------------
# MultiHeadAttention forward
# ----------------------------------------------------------------------------
def multi_head_attention(q, k, v, mask, params, n_heads,
                         compute_dtype=jnp.float32):
    B, Sq, E = q.shape
    assert E % n_heads == 0
    Skv = k.shape[1]
    D = E // n_heads
    cd = compute_dtype

    # pre-transpose weights once in the wrapper: kernels consume (E_in, E_out)
    wq_t = params["Wq"].T.astype(cd)
    wk_t = params["Wk"].T.astype(cd)
    wv_t = params["Wv"].T.astype(cd)
    wp_t = params["Wp"].T.astype(cd)
    b_qkv = jnp.stack([params["bq"], params["bk"], params["bv"]], axis=0)  # (3,E) f32

    Q, K, V = fused_qkv_proj(q.astype(cd), k.astype(cd), v.astype(cd),
                             wq_t, wk_t, wv_t, b_qkv, cd)

    # exact PyTorch `.view(B, n_heads, S, head_dim)` semantics (flat split)
    Qh = Q.reshape(B, n_heads, Sq, D)
    Kh = K.reshape(B, n_heads, Skv, D)
    Vh = V.reshape(B, n_heads, Skv, D)

    # additive mask bias (finite large negative), computed once in the wrapper
    mask_bias = jnp.where(mask != 0, 0.0, MASK_BIAS).astype(jnp.float32)
    mask_bias = mask_bias.reshape(B, 1, Skv)

    attn = pallas_sdpa(Qh, Kh, Vh, mask_bias, out_dtype=cd)   # (B, H, Sq, D)
    attn = attn.reshape(B, Sq, E)                             # `.view(B, Sq, E)`

    return pallas_out_proj(attn, wp_t, params["bp"])


# ----------------------------------------------------------------------------
# Pure-JAX reference (mirrors the PyTorch forward, eval-mode dropout)
# ----------------------------------------------------------------------------
def reference_mha(q, k, v, mask, params, n_heads):
    B, Sq, E = q.shape
    D = E // n_heads

    def lin(x, w, b):
        return x @ w.T + b

    Q = lin(q, params["Wq"], params["bq"]).reshape(B, n_heads, Sq, D)
    K = lin(k, params["Wk"], params["bk"]).reshape(B, n_heads, k.shape[1], D)
    V = lin(v, params["Wv"], params["bv"]).reshape(B, n_heads, v.shape[1], D)

    s = jnp.einsum("bhqd,bhkd->bhqk", Q, K) / math.sqrt(D)
    s = jnp.where(mask[:, None, None, :] == 0, NEG_INF, s)
    p = jax.nn.softmax(s, axis=-1)
    o = jnp.einsum("bhqk,bhkd->bhqd", p, V).reshape(B, Sq, E)
    return lin(o, params["Wp"], params["bp"])


if __name__ == "__main__":
    B, Sq, Skv, E, H = 2, 8, 8, 32, 4

    key = jax.random.PRNGKey(0)
    ks = jax.random.split(key, 12)

    q = jax.random.normal(ks[0], (B, Sq, E), jnp.float32)
    k = jax.random.normal(ks[1], (B, Skv, E), jnp.float32)
    v = jax.random.normal(ks[2], (B, Skv, E), jnp.float32)

    # deterministic nn.Linear-style init: U(-1/sqrt(E), 1/sqrt(E))
    lim = 1.0 / math.sqrt(E)
    params = {
        "Wq": jax.random.uniform(ks[3], (E, E), jnp.float32, -lim, lim),
        "bq": jax.random.uniform(ks[4], (E,), jnp.float32, -lim, lim),
        "Wk": jax.random.uniform(ks[5], (E, E), jnp.float32, -lim, lim),
        "bk": jax.random.uniform(ks[6], (E,), jnp.float32, -lim, lim),
        "Wv": jax.random.uniform(ks[7], (E, E), jnp.float32, -lim, lim),
        "bv": jax.random.uniform(ks[8], (E,), jnp.float32, -lim, lim),
        "Wp": jax.random.uniform(ks[9], (E, E), jnp.float32, -lim, lim),
        "bp": jax.random.uniform(ks[10], (E,), jnp.float32, -lim, lim),
    }

    # padding-style mask: batch 1 masks out its last 2 kv positions
    mask = jnp.ones((B, Skv), jnp.float32).at[1, -2:].set(0.0)

    mha = jax.jit(multi_head_attention,
                  static_argnames=("n_heads", "compute_dtype"))

    ref = reference_mha(q, k, v, mask, params, n_heads=H)

    # f32 path (tight tolerance; approx reciprocal accounts for the 1e-3 bound)
    out_f32 = jax.block_until_ready(
        mha(q, k, v, mask, params, n_heads=H, compute_dtype=jnp.float32))
    assert out_f32.shape == (B, Sq, E)
    assert jnp.allclose(out_f32, ref, atol=1e-3, rtol=1e-3), "f32 mismatch vs reference"

    # bf16-operand / f32-accumulation path (halves MXU/HBM operand traffic)
    out_bf16 = jax.block_until_ready(
        mha(q, k, v, mask, params, n_heads=H, compute_dtype=jnp.bfloat16))
    assert out_bf16.shape == (B, Sq, E)
    assert jnp.allclose(out_bf16, ref, atol=5e-2, rtol=5e-2), "bf16 mismatch vs reference"

    print("KERNEL_OK")
</pallas_src>

<mosaic_0001>
module attributes {stable_mosaic.version = 11 : i64} {
  func.func @_qkv_proj_kernel(%arg0: i32, %arg1: memref<1x8x32xf32, #tpu.memory_space<vmem>>, %arg2: memref<1x8x32xf32, #tpu.memory_space<vmem>>, %arg3: memref<1x8x32xf32, #tpu.memory_space<vmem>>, %arg4: memref<32x32xf32, #tpu.memory_space<vmem>>, %arg5: memref<32x32xf32, #tpu.memory_space<vmem>>, %arg6: memref<32x32xf32, #tpu.memory_space<vmem>>, %arg7: memref<3x32xf32, #tpu.memory_space<vmem>>, %arg8: memref<1x8x32xf32, #tpu.memory_space<vmem>>, %arg9: memref<1x8x32xf32, #tpu.memory_space<vmem>>, %arg10: memref<1x8x32xf32, #tpu.memory_space<vmem>>) attributes {dimension_semantics = [#tpu.dimension_semantics<parallel>], iteration_bounds = array<i64: 2>, scalar_prefetch = 0 : i64, scratch_operands = 0 : i64, tpu.core_type = #tpu.core_type<tc>, window_params = [{transform_indices = @transform_0, window_bounds = array<i64: 1, 8, 32>}, {transform_indices = @transform_1, window_bounds = array<i64: 1, 8, 32>}, {transform_indices = @transform_2, window_bounds = array<i64: 1, 8, 32>}, {pipeline_mode = #tpu.pipeline_mode<synchronous>, transform_indices = @transform_3, window_bounds = array<i64: 32, 32>}, {pipeline_mode = #tpu.pipeline_mode<synchronous>, transform_indices = @transform_4, window_bounds = array<i64: 32, 32>}, {pipeline_mode = #tpu.pipeline_mode<synchronous>, transform_indices = @transform_5, window_bounds = array<i64: 32, 32>}, {pipeline_mode = #tpu.pipeline_mode<synchronous>, transform_indices = @transform_6, window_bounds = array<i64: 3, 32>}, {transform_indices = @transform_7, window_bounds = array<i64: 1, 8, 32>}, {transform_indices = @transform_8, window_bounds = array<i64: 1, 8, 32>}, {transform_indices = @transform_9, window_bounds = array<i64: 1, 8, 32>}]} {
    %c0 = arith.constant 0 : index
    %c0_0 = arith.constant 0 : index
    %0 = vector.load %arg7[%c0, %c0_0] : memref<3x32xf32, #tpu.memory_space<vmem>>, vector<3x32xf32>
    %c0_1 = arith.constant 0 : index
    %c0_2 = arith.constant 0 : index
    %c0_3 = arith.constant 0 : index
    %1 = vector.load %arg1[%c0_1, %c0_2, %c0_3] : memref<1x8x32xf32, #tpu.memory_space<vmem>>, vector<1x8x32xf32>
    %2 = vector.shape_cast %1 : vector<1x8x32xf32> to vector<8x32xf32>
    %c0_4 = arith.constant 0 : index
    %c0_5 = arith.constant 0 : index
    %3 = vector.load %arg4[%c0_4, %c0_5] : memref<32x32xf32, #tpu.memory_space<vmem>>, vector<32x32xf32>
    %cst = arith.constant dense<0.000000e+00> : vector<8x32xf32>
    %4 = tpu.matmul %2, %3, %cst {dimension_numbers = #tpu.dot_dimension_numbers<[1], [0], [0], [1], [0, 0, 1, 1], [], []>} : vector<8x32xf32>, vector<32x32xf32>, vector<8x32xf32> -> vector<8x32xf32>
    %5 = vector.extract_strided_slice %0 {offsets = [0, 0], sizes = [1, 32], strides = [1, 1]} : vector<3x32xf32> to vector<1x32xf32>
    %6 = vector.broadcast %5 : vector<1x32xf32> to vector<8x32xf32>
    %7 = arith.addf %4, %6 : vector<8x32xf32>
    %c0_6 = arith.constant 0 : index
    %c0_7 = arith.constant 0 : index
    %c0_8 = arith.constant 0 : index
    %8 = vector.load %arg8[%c0_6, %c0_7, %c0_8] : memref<1x8x32xf32, #tpu.memory_space<vmem>>, vector<1x8x32xf32>
    %9 = vector.shape_cast %8 : vector<1x8x32xf32> to vector<8x32xf32>
    %10 = vector.shape_cast %7 : vector<8x32xf32> to vector<1x8x32xf32>
    tpu.vector_store %arg8[%c0_6, %c0_7, %c0_8], %10 {strides = array<i32>} : memref<1x8x32xf32, #tpu.memory_space<vmem>>, vector<1x8x32xf32>,
    %c0_9 = arith.constant 0 : index
    %c0_10 = arith.constant 0 : index
    %c0_11 = arith.constant 0 : index
    %11 = vector.load %arg2[%c0_9, %c0_10, %c0_11] : memref<1x8x32xf32, #tpu.memory_space<vmem>>, vector<1x8x32xf32>
    %12 = vector.shape_cast %11 : vector<1x8x32xf32> to vector<8x32xf32>
    %c0_12 = arith.constant 0 : index
    %c0_13 = arith.constant 0 : index
    %13 = vector.load %arg5[%c0_12, %c0_13] : memref<32x32xf32, #tpu.memory_space<vmem>>, vector<32x32xf32>
    %cst_14 = arith.constant dense<0.000000e+00> : vector<8x32xf32>
    %14 = tpu.matmul %12, %13, %cst_14 {dimension_numbers = #tpu.dot_dimension_numbers<[1], [0], [0], [1], [0, 0, 1, 1], [], []>} : vector<8x32xf32>, vector<32x32xf32>, vector<8x32xf32> -> vector<8x32xf32>
    %15 = vector.extract_strided_slice %0 {offsets = [1, 0], sizes = [1, 32], strides = [1, 1]} : vector<3x32xf32> to vector<1x32xf32>
    %16 = vector.broadcast %15 : vector<1x32xf32> to vector<8x32xf32>
    %17 = arith.addf %14, %16 : vector<8x32xf32>
    %c0_15 = arith.constant 0 : index
    %c0_16 = arith.constant 0 : index
    %c0_17 = arith.constant 0 : index
    %18 = vector.load %arg9[%c0_15, %c0_16, %c0_17] : memref<1x8x32xf32, #tpu.memory_space<vmem>>, vector<1x8x32xf32>
    %19 = vector.shape_cast %18 : vector<1x8x32xf32> to vector<8x32xf32>
    %20 = vector.shape_cast %17 : vector<8x32xf32> to vector<1x8x32xf32>
    tpu.vector_store %arg9[%c0_15, %c0_16, %c0_17], %20 {strides = array<i32>} : memref<1x8x32xf32, #tpu.memory_space<vmem>>, vector<1x8x32xf32>,
    %c0_18 = arith.constant 0 : index
    %c0_19 = arith.constant 0 : index
    %c0_20 = arith.constant 0 : index
    %21 = vector.load %arg3[%c0_18, %c0_19, %c0_20] : memref<1x8x32xf32, #tpu.memory_space<vmem>>, vector<1x8x32xf32>
    %22 = vector.shape_cast %21 : vector<1x8x32xf32> to vector<8x32xf32>
    %c0_21 = arith.constant 0 : index
    %c0_22 = arith.constant 0 : index
    %23 = vector.load %arg6[%c0_21, %c0_22] : memref<32x32xf32, #tpu.memory_space<vmem>>, vector<32x32xf32>
    %cst_23 = arith.constant dense<0.000000e+00> : vector<8x32xf32>
    %24 = tpu.matmul %22, %23, %cst_23 {dimension_numbers = #tpu.dot_dimension_numbers<[1], [0], [0], [1], [0, 0, 1, 1], [], []>} : vector<8x32xf32>, vector<32x32xf32>, vector<8x32xf32> -> vector<8x32xf32>
    %25 = vector.extract_strided_slice %0 {offsets = [2, 0], sizes = [1, 32], strides = [1, 1]} : vector<3x32xf32> to vector<1x32xf32>
    %26 = vector.broadcast %25 : vector<1x32xf32> to vector<8x32xf32>
    %27 = arith.addf %24, %26 : vector<8x32xf32>
    %c0_24 = arith.constant 0 : index
    %c0_25 = arith.constant 0 : index
    %c0_26 = arith.constant 0 : index
    %28 = vector.load %arg10[%c0_24, %c0_25, %c0_26] : memref<1x8x32xf32, #tpu.memory_space<vmem>>, vector<1x8x32xf32>
    %29 = vector.shape_cast %28 : vector<1x8x32xf32> to vector<8x32xf32>
    %30 = vector.shape_cast %27 : vector<8x32xf32> to vector<1x8x32xf32>
    tpu.vector_store %arg10[%c0_24, %c0_25, %c0_26], %30 {strides = array<i32>} : memref<1x8x32xf32, #tpu.memory_space<vmem>>, vector<1x8x32xf32>,
    return
  }
  func.func @transform_0(%arg0: i32) -> (i32, i32, i32) {
    %c0_i32 = arith.constant 0 : i32
    %c0_i32_0 = arith.constant 0 : i32
    %c0_i32_1 = arith.constant 0 : i32
    return %arg0, %c0_i32, %c0_i32_0 : i32, i32, i32
  }
  func.func @transform_1(%arg0: i32) -> (i32, i32, i32) {
    %c0_i32 = arith.constant 0 : i32
    %c0_i32_0 = arith.constant 0 : i32
    %c0_i32_1 = arith.constant 0 : i32
    return %arg0, %c0_i32, %c0_i32_0 : i32, i32, i32
  }
  func.func @transform_2(%arg0: i32) -> (i32, i32, i32) {
    %c0_i32 = arith.constant 0 : i32
    %c0_i32_0 = arith.constant 0 : i32
    %c0_i32_1 = arith.constant 0 : i32
    return %arg0, %c0_i32, %c0_i32_0 : i32, i32, i32
  }
  func.func @transform_3(%arg0: i32) -> (i32, i32) {
    %c0_i32 = arith.constant 0 : i32
    %c0_i32_0 = arith.constant 0 : i32
    %c0_i32_1 = arith.constant 0 : i32
    return %c0_i32, %c0_i32_0 : i32, i32
  }
  func.func @transform_4(%arg0: i32) -> (i32, i32) {
    %c0_i32 = arith.constant 0 : i32
    %c0_i32_0 = arith.constant 0 : i32
    %c0_i32_1 = arith.constant 0 : i32
    return %c0_i32, %c0_i32_0 : i32, i32
  }
  func.func @transform_5(%arg0: i32) -> (i32, i32) {
    %c0_i32 = arith.constant 0 : i32
    %c0_i32_0 = arith.constant 0 : i32
    %c0_i32_1 = arith.constant 0 : i32
    return %c0_i32, %c0_i32_0 : i32, i32
  }
  func.func @transform_6(%arg0: i32) -> (i32, i32) {
    %c0_i32 = arith.constant 0 : i32
    %c0_i32_0 = arith.constant 0 : i32
    %c0_i32_1 = arith.constant 0 : i32
    return %c0_i32, %c0_i32_0 : i32, i32
  }
  func.func @transform_7(%arg0: i32) -> (i32, i32, i32) {
    %c0_i32 = arith.constant 0 : i32
    %c0_i32_0 = arith.constant 0 : i32
    %c0_i32_1 = arith.constant 0 : i32
    return %arg0, %c0_i32, %c0_i32_0 : i32, i32, i32
  }
  func.func @transform_8(%arg0: i32) -> (i32, i32, i32) {
    %c0_i32 = arith.constant 0 : i32
    %c0_i32_0 = arith.constant 0 : i32
    %c0_i32_1 = arith.constant 0 : i32
    return %arg0, %c0_i32, %c0_i32_0 : i32, i32, i32
  }
  func.func @transform_9(%arg0: i32) -> (i32, i32, i32) {
    %c0_i32 = arith.constant 0 : i32
    %c0_i32_0 = arith.constant 0 : i32
    %c0_i32_1 = arith.constant 0 : i32
    return %arg0, %c0_i32, %c0_i32_0 : i32, i32, i32
  }
}

module attributes {stable_mosaic.version = 11 : i64} {
  func.func @_out_proj_kernel(%arg0: i32, %arg1: memref<1x8x32xf32, #tpu.memory_space<vmem>>, %arg2: memref<32x32xf32, #tpu.memory_space<vmem>>, %arg3: memref<1x32xf32, #tpu.memory_space<vmem>>, %arg4: memref<1x8x32xf32, #tpu.memory_space<vmem>>) attributes {dimension_semantics = [#tpu.dimension_semantics<parallel>], iteration_bounds = array<i64: 2>, scalar_prefetch = 0 : i64, scratch_operands = 0 : i64, tpu.core_type = #tpu.core_type<tc>, window_params = [{transform_indices = @transform_0, window_bounds = array<i64: 1, 8, 32>}, {pipeline_mode = #tpu.pipeline_mode<synchronous>, transform_indices = @transform_1, window_bounds = array<i64: 32, 32>}, {pipeline_mode = #tpu.pipeline_mode<synchronous>, transform_indices = @transform_2, window_bounds = array<i64: 1, 32>}, {transform_indices = @transform_3, window_bounds = array<i64: 1, 8, 32>}]} {
    %c0 = arith.constant 0 : index
    %c0_0 = arith.constant 0 : index
    %c0_1 = arith.constant 0 : index
    %0 = vector.load %arg1[%c0, %c0_0, %c0_1] : memref<1x8x32xf32, #tpu.memory_space<vmem>>, vector<1x8x32xf32>
    %1 = vector.shape_cast %0 : vector<1x8x32xf32> to vector<8x32xf32>
    %c0_2 = arith.constant 0 : index
    %c0_3 = arith.constant 0 : index
    %2 = vector.load %arg2[%c0_2, %c0_3] : memref<32x32xf32, #tpu.memory_space<vmem>>, vector<32x32xf32>
    %cst = arith.constant dense<0.000000e+00> : vector<8x32xf32>
    %3 = tpu.matmul %1, %2, %cst {dimension_numbers = #tpu.dot_dimension_numbers<[1], [0], [0], [1], [0, 0, 1, 1], [], []>} : vector<8x32xf32>, vector<32x32xf32>, vector<8x32xf32> -> vector<8x32xf32>
    %c0_4 = arith.constant 0 : index
    %c0_5 = arith.constant 0 : index
    %4 = vector.load %arg3[%c0_4, %c0_5] : memref<1x32xf32, #tpu.memory_space<vmem>>, vector<1x32xf32>
    %5 = vector.broadcast %4 : vector<1x32xf32> to vector<8x32xf32>
    %6 = arith.addf %3, %5 : vector<8x32xf32>
    %c0_6 = arith.constant 0 : index
    %c0_7 = arith.constant 0 : index
    %c0_8 = arith.constant 0 : index
    %7 = vector.load %arg4[%c0_6, %c0_7, %c0_8] : memref<1x8x32xf32, #tpu.memory_space<vmem>>, vector<1x8x32xf32>
    %8 = vector.shape_cast %7 : vector<1x8x32xf32> to vector<8x32xf32>
    %9 = vector.shape_cast %6 : vector<8x32xf32> to vector<1x8x32xf32>
    tpu.vector_store %arg4[%c0_6, %c0_7, %c0_8], %9 {strides = array<i32>} : memref<1x8x32xf32, #tpu.memory_space<vmem>>, vector<1x8x32xf32>,
    return
  }
  func.func @transform_0(%arg0: i32) -> (i32, i32, i32) {
    %c0_i32 = arith.constant 0 : i32
    %c0_i32_0 = arith.constant 0 : i32
    %c0_i32_1 = arith.constant 0 : i32
    return %arg0, %c0_i32, %c0_i32_0 : i32, i32, i32
  }
  func.func @transform_1(%arg0: i32) -> (i32, i32) {
    %c0_i32 = arith.constant 0 : i32
    %c0_i32_0 = arith.constant 0 : i32
    %c0_i32_1 = arith.constant 0 : i32
    return %c0_i32, %c0_i32_0 : i32, i32
  }
  func.func @transform_2(%arg0: i32) -> (i32, i32) {
    %c0_i32 = arith.constant 0 : i32
    %c0_i32_0 = arith.constant 0 : i32
    %c0_i32_1 = arith.constant 0 : i32
    return %c0_i32, %c0_i32_0 : i32, i32
  }
  func.func @transform_3(%arg0: i32) -> (i32, i32, i32) {
    %c0_i32 = arith.constant 0 : i32
    %c0_i32_0 = arith.constant 0 : i32
    %c0_i32_1 = arith.constant 0 : i32
    return %arg0, %c0_i32, %c0_i32_0 : i32, i32, i32
  }
}

module attributes {stable_mosaic.version = 11 : i64} {
  func.func @_sdpa_kernel(%arg0: i32, %arg1: memref<1x4x8x8xf32, #tpu.memory_space<vmem>>, %arg2: memref<1x4x8x8xf32, #tpu.memory_space<vmem>>, %arg3: memref<1x4x8x8xf32, #tpu.memory_space<vmem>>, %arg4: memref<1x1x8xf32, #tpu.memory_space<vmem>>, %arg5: memref<1x4x8x8xf32, #tpu.memory_space<vmem>>) attributes {dimension_semantics = [#tpu.dimension_semantics<parallel>], iteration_bounds = array<i64: 2>, scalar_prefetch = 0 : i64, scratch_operands = 0 : i64, tpu.core_type = #tpu.core_type<tc>, window_params = [{transform_indices = @transform_0, window_bounds = array<i64: 1, 4, 8, 8>}, {transform_indices = @transform_1, window_bounds = array<i64: 1, 4, 8, 8>}, {transform_indices = @transform_2, window_bounds = array<i64: 1, 4, 8, 8>}, {transform_indices = @transform_3, window_bounds = array<i64: 1, 1, 8>}, {transform_indices = @transform_4, window_bounds = array<i64: 1, 4, 8, 8>}]} {
    %c0 = arith.constant 0 : index
    %c0_0 = arith.constant 0 : index
    %c0_1 = arith.constant 0 : index
    %c0_2 = arith.constant 0 : index
    %0 = vector.load %arg1[%c0, %c0_0, %c0_1, %c0_2] : memref<1x4x8x8xf32, #tpu.memory_space<vmem>>, vector<1x4x8x8xf32>
    %1 = vector.shape_cast %0 : vector<1x4x8x8xf32> to vector<4x8x8xf32>
    %c0_3 = arith.constant 0 : index
    %c0_4 = arith.constant 0 : index
    %c0_5 = arith.constant 0 : index
    %c0_6 = arith.constant 0 : index
    %2 = vector.load %arg2[%c0_3, %c0_4, %c0_5, %c0_6] : memref<1x4x8x8xf32, #tpu.memory_space<vmem>>, vector<1x4x8x8xf32>
    %3 = vector.shape_cast %2 : vector<1x4x8x8xf32> to vector<4x8x8xf32>
    %c0_7 = arith.constant 0 : index
    %c0_8 = arith.constant 0 : index
    %c0_9 = arith.constant 0 : index
    %c0_10 = arith.constant 0 : index
    %4 = vector.load %arg3[%c0_7, %c0_8, %c0_9, %c0_10] : memref<1x4x8x8xf32, #tpu.memory_space<vmem>>, vector<1x4x8x8xf32>
    %5 = vector.shape_cast %4 : vector<1x4x8x8xf32> to vector<4x8x8xf32>
    %cst = arith.constant 0.353553385 : f32
    %6 = vector.broadcast %cst : f32 to vector<4x8x8xf32>
    %7 = arith.mulf %1, %6 : vector<4x8x8xf32>
    %cst_11 = arith.constant dense<0.000000e+00> : vector<4x8x8xf32>
    %8 = tpu.matmul %7, %3, %cst_11 {dimension_numbers = #tpu.dot_dimension_numbers<[2], [2], [1], [1], [0, 0, 0, 1, 1, 1], [0], [0]>} : vector<4x8x8xf32>, vector<4x8x8xf32>, vector<4x8x8xf32> -> vector<4x8x8xf32>
    %c0_12 = arith.constant 0 : index
    %c0_13 = arith.constant 0 : index
    %c0_14 = arith.constant 0 : index
    %9 = vector.load %arg4[%c0_12, %c0_13, %c0_14] : memref<1x1x8xf32, #tpu.memory_space<vmem>>, vector<1x1x8xf32>
    %10 = vector.shape_cast %9 : vector<1x1x8xf32> to vector<1x8xf32>
    %11 = vector.shape_cast %10 : vector<1x8xf32> to vector<1x1x8xf32>
    %12 = vector.broadcast %11 : vector<1x1x8xf32> to vector<4x8x8xf32>
    %13 = arith.addf %8, %12 : vector<4x8x8xf32>
    %cst_15 = arith.constant dense<0xFF800000> : vector<4x8xf32>
    %14 = vector.multi_reduction <maximumf>, %13, %cst_15 [2] : vector<4x8x8xf32> to vector<4x8xf32>
    %15 = vector.shape_cast %14 : vector<4x8xf32> to vector<4x8x1xf32>
    %16 = vector.broadcast %15 : vector<4x8x1xf32> to vector<4x8x8xf32>
    %17 = arith.subf %13, %16 : vector<4x8x8xf32>
    %18 = math.exp %17 : vector<4x8x8xf32>
    %cst_16 = arith.constant dense<0.000000e+00> : vector<4x8xf32>
    %19 = vector.multi_reduction <add>, %18, %cst_16 [2] : vector<4x8x8xf32> to vector<4x8xf32>
    %20 = vector.shape_cast %19 : vector<4x8xf32> to vector<4x8x1xf32>
    %21 = tpu.reciprocal %20 {approx = true} : vector<4x8x1xf32> -> vector<4x8x1xf32>
    %22 = vector.broadcast %21 : vector<4x8x1xf32> to vector<4x8x8xf32>
    %23 = arith.mulf %18, %22 : vector<4x8x8xf32>
    %cst_17 = arith.constant dense<0.000000e+00> : vector<4x8x8xf32>
    %24 = tpu.matmul %23, %5, %cst_17 {dimension_numbers = #tpu.dot_dimension_numbers<[2], [1], [1], [2], [0, 0, 0, 1, 1, 2], [0], [0]>} : vector<4x8x8xf32>, vector<4x8x8xf32>, vector<4x8x8xf32> -> vector<4x8x8xf32>
    %c0_18 = arith.constant 0 : index
    %c0_19 = arith.constant 0 : index
    %c0_20 = arith.constant 0 : index
    %c0_21 = arith.constant 0 : index
    %25 = vector.load %arg5[%c0_18, %c0_19, %c0_20, %c0_21] : memref<1x4x8x8xf32, #tpu.memory_space<vmem>>, vector<1x4x8x8xf32>
    %26 = vector.shape_cast %25 : vector<1x4x8x8xf32> to vector<4x8x8xf32>
    %27 = vector.shape_cast %24 : vector<4x8x8xf32> to vector<1x4x8x8xf32>
    tpu.vector_store %arg5[%c0_18, %c0_19, %c0_20, %c0_21], %27 {strides = array<i32>} : memref<1x4x8x8xf32, #tpu.memory_space<vmem>>, vector<1x4x8x8xf32>,
    return
  }
  func.func @transform_0(%arg0: i32) -> (i32, i32, i32, i32) {
    %c0_i32 = arith.constant 0 : i32
    %c0_i32_0 = arith.constant 0 : i32
    %c0_i32_1 = arith.constant 0 : i32
    %c0_i32_2 = arith.constant 0 : i32
    return %arg0, %c0_i32, %c0_i32_0, %c0_i32_1 : i32, i32, i32, i32
  }
  func.func @transform_1(%arg0: i32) -> (i32, i32, i32, i32) {
    %c0_i32 = arith.constant 0 : i32
    %c0_i32_0 = arith.constant 0 : i32
    %c0_i32_1 = arith.constant 0 : i32
    %c0_i32_2 = arith.constant 0 : i32
    return %arg0, %c0_i32, %c0_i32_0, %c0_i32_1 : i32, i32, i32, i32
  }
  func.func @transform_2(%arg0: i32) -> (i32, i32, i32, i32) {
    %c0_i32 = arith.constant 0 : i32
    %c0_i32_0 = arith.constant 0 : i32
    %c0_i32_1 = arith.constant 0 : i32
    %c0_i32_2 = arith.constant 0 : i32
    return %arg0, %c0_i32, %c0_i32_0, %c0_i32_1 : i32, i32, i32, i32
  }
  func.func @transform_3(%arg0: i32) -> (i32, i32, i32) {
    %c0_i32 = arith.constant 0 : i32
    %c0_i32_0 = arith.constant 0 : i32
    %c0_i32_1 = arith.constant 0 : i32
    return %arg0, %c0_i32, %c0_i32_0 : i32, i32, i32
  }
  func.func @transform_4(%arg0: i32) -> (i32, i32, i32, i32) {
    %c0_i32 = arith.constant 0 : i32
    %c0_i32_0 = arith.constant 0 : i32
    %c0_i32_1 = arith.constant 0 : i32
    %c0_i32_2 = arith.constant 0 : i32
    return %arg0, %c0_i32, %c0_i32_0, %c0_i32_1 : i32, i32, i32, i32
  }
}

</mosaic_0001>

<bundles_post_ra>
// kernel: multi_head_attention.5
= control target key start
LH: loop header
LB: loop body
LE: loop exit
PB: predicated region body
PF: predicated region fallthrough
CT: control target
= control target key end

     0   :  { %8 = vsyncpa [#allocation3], 0  ;;  %s588_s0 = inlined_call_operand.vmem [shape: f32[2,8,32], index: 0, kind: input, shape index: {}]   ;;  %s589_s1 = inlined_call_operand.vmem [shape: f32[32,32], index: 1, kind: input, shape index: {}]   ;;  %s590_s2 = inlined_call_operand.vmem [shape: f32[1,32], index: 2, kind: input, shape index: {}]   ;;  %s591_s3 = inlined_call_operand.hbm [shape: f32[2,8,32], index: 3, kind: output, shape index: {}]  }
   0x1   :  { %10 = vsyncpa [#allocation3 + $0x1], 0  ;;  %s480_s12 = smov 0   ;;  %s482_s13 = smov 0  }
   0x2   :  { %s484_s14 = smov 0   ;;  %s486_s15 = smov 0  }
   0x3 LB: > { %s501_s16 = sadd.s32 4294967295, %s455_s15   ;;  %s326_s17 = sadd.s32 4294967294, %s455_s15   ;;  %s455_s15 = sphi %s486_s15, %s597_s15   ;;  %s451_s14 = sphi %s484_s14, %s596_s14   ;;  %s447_s13 = sphi %s482_s13, %s595_s13   ;;  %s443_s12 = sphi %s480_s12, %s594_s12  }
   0x4   : > { %s505_s18 = sadd.s32 1, %s455_s15   ;;  %s91_s19 = sadd.s32 1, %s451_s14 }
   0x5   : > { %s88_s20 = ssub.s32 %s455_s15, %s505_s18  ;;  %p101_p0 = scmp.ne.s32.totalorder %s451_s14, %s447_s13 }
   0x6   : > { %p89_p1 = scmp.eq.s32.totalorder %s88_s20, 0  ;;  %p102_p2 = scmp.eq.s32.totalorder %s501_s16, 1 }
   0x7   : > { %p107_p3 = scmp.ne.s32.totalorder %s447_s13, %s443_s12  ;;  %p108_p4 = scmp.eq.s32.totalorder %s326_s17, 1 }
   0x8   : > { %s516_s21 = scalar_select %p89_p1, %s451_s14, %s91_s19  }
   0x9   : > { %p518_p5 = por %p102_p2, %p101_p0  ;;  %p522_p6 = por %p108_p4, %p107_p3 }
   0xa   : > { %p329_p7 = scmp.ge.s32.totalorder %s455_s15, 1  ;;  %p139_p8 = scmp.lt.s32.totalorder %s455_s15, 3 }
   0xc   : > { %p140_p9 = pnand %p329_p7, %p139_p8 }
   0xd   : > { %p162_p10 = scmp.lt.s32.totalorder (!%p140_p9), %s501_s16, 1  ;;  %s159_s10 = sand.u32 (!%p140_p9), 1, %s447_s13  }
   0xe   : > { %143 = sbr.rel (%p140_p9) target bundleno = 236 (0xec), region = 32  ;;  %s330_s11 = sshll.u32 (!%p140_p9), %s159_s10, 3 }
   0xf   : > { %s335_s20 = sshll.u32 (!%p140_p9), %s501_s16, 7  ;;  %s161_s24 = scalar_lea.vmem (!%p140_p9), [#allocation2], %s330_s11 }
  0x10   : > { %s267_s25 = sshll.u32 (!%p140_p9), %s161_s24, 4  ;;  %s254_s29 = scalar_lea.sflag (!%p140_p9), [#allocation3], %s159_s10  ;;  %s268_s25 = int_to_ptr.vmem [resolvable:$true] %s267_s25 }
  0x11   : > { %s395_s30 = scalar_lea.vmem (!%p140_p9), %s268_s25, 128 }
  0x12   : > { %p396_p11 = scmp.ne.s32.totalorder (!%p140_p9), %s268_s25, %s395_s30 }
  0x13   : > { %v170_v0 = vld [vmem:[%s589_s1 + $0x18] sm:$0xff]  ;;  %v457_v1 = vmov 0.0   ;;  %v169_v2 = vld [vmem:[%s589_s1 + $0x10] sm:$0xff]  ;;  %vm458_vm0 = vmmov 0   ;;  %s163_s28 = scalar_select %p162_p10, %s501_s16, 1  ;;  %v168_v3 = vld [vmem:[%s589_s1 + $0x8] sm:$0xff] }
  0x14   : > { %343 = vmatprep.subr.mxu0 %v457_v1  ;;  %351 = vmatprep.mubr.msk.f32.mxu0 %vm458_vm0, %v457_v1  ;;  %v167_v4 = vld [vmem:[%s589_s1] sm:$0xff]  ;;  %vm178_vm1 = vcmask 261120   ;;  %p397_p12 = pnand %p396_p11, %p518_p5 }
  0x15   : > { %344 = vmatpush3.msra.mxu0 %v170_v0  ;;  %s331_s4 = sshll.u32 %s163_s28, 3  ;;  %v332_v6 = vld [vmem:[%s590_s2] ss:$0 sm:$0xff]  ;;  %s553_s28 = scalar_lea.hbm %s591_s3, %s335_s20 }
  0x16   : > { %345 = vmatprep.subr.mxu0 %v457_v1  ;;  %s165_s9 = scalar_lea.vmem %s588_s0, %s331_s4  ;;  %p398_p13 = pneg %p397_p12 }
  0x17   : > { %346 = vmatpush3.msra.mxu0 %v169_v2  ;;  %v166_v5 = vld [vmem:[%s165_s9] sm:$0xff]  ;;  %s459_s4 = smov [#allocation2]  }
  0x18   : > { %347 = vmatprep.subr.mxu0 %v457_v1  ;;  %s399_s16 = sshll.u32 %s459_s4, 4  ;;  %s400_s16 = int_to_ptr.vmem [resolvable:$false] %s399_s16 }
  0x19   : > { %348 = vmatpush3.msra.mxu0 %v168_v3  ;;  %s401_s5 = scalar_lea.vmem %s400_s16, 256  ;;  %p402_p0 = scmp.lt.s32.totalorder %s268_s25, %s400_s16 }
  0x1a   : > { %349 = vmatprep.subr.mxu0 %v457_v1  ;;  %p403_p1 = scmp.lt.s32.totalorder %s401_s5, %s395_s30 }
  0x1b   : > { %350 = vmatpush3.msra.mxu0 %v167_v4 }
  0x1c   : > { %352 = vmatmul.mubr.msk.f32.vlgmr.msra.gmra.mxu0 %vm178_vm1, %v166_v5  ;;  %p404_p2 = por %p403_p1, %p402_p0 }
  0x1e   : > { %p405_p3 = pnand %p404_p2, %p398_p13 }
  0xdc   : > { %v248_v7 = vpop.f32.mrf.mxu0 }
  0xdd   : > { %v249_v8 = vadd.f32 %v332_v6, %v248_v7 }
  0xde   : > { %v353_v9 = vpop.f32.mrf.mxu0 }
  0xdf   : > { %252 = vst.msk [vmem:[%s161_s24] sm:$0xff] %vm178_vm1, %v249_v8 }
  0xe0   : > { %408 = shalt.err (!%p405_p3)
}
  0xe1   : > { %s409_s6 = scalar_lea.hbm %s553_s28, 128  ;;  %s413_s9 = scalar_lea.hbm %s591_s3, 256 }
  0xe2   : > { %p410_p4 = scmp.ne.s32.totalorder %s553_s28, %s409_s6  ;;  %p414_p9 = scmp.lt.s32.totalorder %s553_s28, %s591_s3 }
  0xe3   : > { %p415_p10 = scmp.lt.s32.totalorder %s413_s9, %s409_s6 }
  0xe4   : > { %p411_p7 = pnand %p410_p4, %p518_p5 }
  0xe5   : > { %p416_p11 = por %p415_p10, %p414_p9 }
  0xe6   : > { %p412_p8 = pneg %p411_p7 }
  0xe8   : > { %p417_p12 = pnand %p416_p11, %p412_p8 }
  0xea   : > { %420 = shalt.err (!%p417_p12)
}
  0xeb   : > { %354 = dma.vmem_to_hbm [thread:$0]  (%p518_p5), %s268_s25, 128, %s553_s28, %s254_s29  }
  0xec PF: > { %p360_p13 = scmp.ge.s32.totalorder %s455_s15, 2  ;;  %s279_s17 = sand.u32 1, %s443_s12  }
  0xed   : > { %s280_s19 = scalar_lea.sflag [#allocation3], %s279_s17 }
  0xee   : > { %p357_p0 = pnand %p360_p13, %p522_p6 }
  0xf0   : > { %p358_p1 = pneg %p357_p0 }
  0xf2   : > { %438 = dma.done.wait (%p358_p1), %s280_s19, 128  }
  0xf3   : > { %440 = vsyncadd (%p358_p1), %s280_s19, 4294967168  ;;  %p13_p2 = scmp.ge.s32.totalorder %s505_s18, 4   ;;  %s594_s12 = smov %s447_s13 }
  0xf4   : > { %s595_s13 = smov %s451_s14  ;;  %s596_s14 = smov %s516_s21 }
  0xf5   : > { %s597_s15 = smov %s505_s18  ;;  %15 = sbr.rel (!%p13_p2) target bundleno = 3 (0x3), region = 67 }
  0xfa   :  { %285 = vsyncpa [#allocation3], 1 }
  0xfb   :  { %287 = vsyncpa [#allocation3 + $0x1], 1 }

// kernel: multi_head_attention.3
= control target key start
LH: loop header
LB: loop body
LE: loop exit
PB: predicated region body
PF: predicated region fallthrough
CT: control target
= control target key end

     0   :  { %s907_s30 = smov 0   ;;  %s992_s0 = inlined_call_operand.vmem [shape: f32[2,8,32], index: 0, kind: input, shape index: {}]   ;;  %s993_s1 = inlined_call_operand.vmem [shape: f32[2,8,32], index: 1, kind: input, shape index: {}]   ;;  %s994_s2 = inlined_call_operand.vmem [shape: f32[2,8,32], index: 2, kind: input, shape index: {}]   ;;  %s995_s3 = inlined_call_operand.vmem [shape: f32[32,32], index: 3, kind: input, shape index: {}]   ;;  %s996_s4 = inlined_call_operand.vmem [shape: f32[32,32], index: 4, kind: input, shape index: {}]   ;;  %s997_s5 = inlined_call_operand.vmem [shape: f32[32,32], index: 5, kind: input, shape index: {}]   ;;  %s998_s6 = inlined_call_operand.vmem [shape: f32[3,32], index: 6, kind: input, shape index: {}]   ;;  %s999_s7 = inlined_call_operand.vmem [shape: f32[2,8,32], index: 7, kind: output, shape index: {0}]   ;;  %s1000_s8 = inlined_call_operand.vmem [shape: f32[2,8,32], index: 8, kind: output, shape index: {1}]   ;;  %s1001_s9 = inlined_call_operand.vmem [shape: f32[2,8,32], index: 9, kind: output, shape index: {2}]  }
   0x1 LB: > { %s773_s10 = sadd.s32 4294967295, %s853_s30   ;;  %p777_p0 = scmp.ge.s32.totalorder %s853_s30, 1  ;;  %s853_s30 = sphi %s907_s30, %s20_s30  }
   0x2   : > { %p309_p1 = scmp.lt.s32.totalorder %s853_s30, 3 }
   0x4   : > { %p310_p2 = pnand %p777_p0, %p309_p1 }
   0x5   : > { %p359_p3 = scmp.lt.s32.totalorder (!%p310_p2), %s773_s10, 1 }
   0x6   : > { %313 = sbr.rel (%p310_p2) target bundleno = 224 (0xe0), region = 48 }
   0xb   : > { %v388_v0 = vld [vmem:[%s995_s3 + $0x18] sm:$0xff]  ;;  %v855_v1 = vmov 0.0   ;;  %v387_v2 = vld [vmem:[%s995_s3 + $0x10] sm:$0xff]  ;;  %vm856_vm0 = vmmov 0   ;;  %s1003_s10 = smov (!%p359_p3, %s773_s10), 1  ;;  %v386_v5 = vld [vmem:[%s995_s3 + $0x8] sm:$0xff]  ;;  %v389_v16 = vlaneseq }
   0xc   : > { %804 = vmatprep.subr.mxu0 %v855_v1  ;;  %815 = vmatprep.subr.mxu1 %v855_v1  ;;  %v472_v3 = vld [vmem:[%s996_s4 + $0x18] sm:$0xff]  ;;  %v471_v4 = vld [vmem:[%s996_s4 + $0x10] sm:$0xff]  ;;  %s931_s21 = sshll.u32 %s1003_s10, 3  ;;  %v470_v6 = vld [vmem:[%s996_s4 + $0x8] sm:$0xff]  ;;  %vm393_vm1 = vcmask 261120  }
   0xd   : > { %805 = vmatpush3.msra.mxu0 %v388_v0  ;;  %812 = vmatprep.mubr.msk.f32.mxu0 %vm856_vm0, %v855_v1  ;;  %v385_v7 = vld [vmem:[%s995_s3] sm:$0xff]  ;;  %s362_s28 = scalar_lea.vmem %s992_s0, %s931_s21  ;;  %s366_s11 = scalar_lea.vmem %s993_s1, %s931_s21  ;;  %v555_v9 = vld [vmem:[%s997_s5 + $0x18] sm:$0xff]  ;;  %v554_v11 = vld [vmem:[%s997_s5 + $0x10] sm:$0xff]  ;;  %v390_v17 = vshrl.u32 %v389_v16, 7 }
   0xe   : > { %806 = vmatprep.subr.mxu0 %v855_v1  ;;  %816 = vmatpush3.msra.mxu1 %v472_v3  ;;  %v384_v8 = vld [vmem:[%s362_s28] sm:$0xff]  ;;  %v553_v13 = vld [vmem:[%s997_s5 + $0x8] sm:$0xff]  ;;  %s370_s23 = scalar_lea.vmem %s994_s2, %s931_s21  ;;  %s374_s10 = scalar_lea.vmem %s999_s7, %s931_s21 }
   0xf   : > { %807 = vmatpush3.msra.mxu0 %v387_v2  ;;  %817 = vmatprep.subr.mxu1 %v855_v1  ;;  %v469_v10 = vld [vmem:[%s996_s4] sm:$0xff]  ;;  %v391_v18 = vsub.s32 0, %v390_v17  ;;  %v475_v20 = vsub.s32 1, %v390_v17  ;;  %v558_v25 = vsub.s32 2, %v390_v17  ;;  %s378_s13 = scalar_lea.vmem %s1000_s8, %s931_s21  ;;  %s382_s16 = scalar_lea.vmem %s1001_s9, %s931_s21 }
  0x10   : > { %808 = vmatprep.subr.mxu0 %v855_v1  ;;  %818 = vmatpush3.msra.mxu1 %v471_v4  ;;  %v468_v12 = vld [vmem:[%s366_s11] sm:$0xff] }
  0x11   : > { %809 = vmatpush3.msra.mxu0 %v386_v5  ;;  %819 = vmatprep.subr.mxu1 %v855_v1  ;;  %v552_v14 = vld [vmem:[%s997_s5] sm:$0xff] }
  0x12   : > { %810 = vmatprep.subr.mxu0 %v855_v1  ;;  %820 = vmatpush3.msra.mxu1 %v470_v6  ;;  %v551_v15 = vld [vmem:[%s370_s23] sm:$0xff] }
  0x13   : > { %811 = vmatpush3.msra.mxu0 %v385_v7  ;;  %821 = vmatprep.subr.mxu1 %v855_v1  ;;  %v383_v19 = vld [vmem:[%s998_s6] sm:$0x7] }
  0x14   : > { %813 = vmatmul.mubr.msk.f32.vlgmr.msra.gmra.mxu0 %vm393_vm1, %v384_v8  ;;  %826 = vmatprep.subr.mxu0 %v855_v1  ;;  %v392_v21 = vrot.slane %v383_v19, %v391_v18  ;;  %v476_v23 = vrot.slane %v383_v19, %v475_v20  ;;  %v559_v30 = vrot.slane %v383_v19, %v558_v25 }
  0x15   : > { %827 = vmatpush3.msra.mxu0 %v555_v9  ;;  %822 = vmatpush3.msra.mxu1 %v469_v10 }
  0x16   : > { %828 = vmatprep.subr.mxu0 %v855_v1  ;;  %823 = vmatprep.mubr.msk.f32.mxu1 %vm856_vm0, %v855_v1 }
  0x17   : > { %829 = vmatpush3.msra.mxu0 %v554_v11  ;;  %824 = vmatmul.mubr.msk.f32.vlgmr.msra.gmra.mxu1 %vm393_vm1, %v468_v12 }
  0x18   : > { %830 = vmatprep.subr.mxu0 %v855_v1  ;;  %834 = vmatprep.mubr.msk.f32.mxu0 %vm856_vm0, %v855_v1 }
  0x19   : > { %831 = vmatpush3.msra.mxu0 %v553_v13 }
  0x1a   : > { %832 = vmatprep.subr.mxu0 %v855_v1 }
  0x1b   : > { %833 = vmatpush3.msra.mxu0 %v552_v14 }
  0x1c   : > { %835 = vmatmul.mubr.msk.f32.vlgmr.msra.gmra.mxu0 %vm393_vm1, %v551_v15 }
  0xd4   : > { %v463_v22 = vpop.f32.mrf.mxu0 }
  0xd5   : > { %v464_v24 = vadd.f32 %v463_v22, %v392_v21 }
  0xd6   : > { %v814_v26 = vpop.f32.mrf.mxu0 }
  0xd7   : > { %467 = vst.msk [vmem:[%s374_s10] sm:$0xff] %vm393_vm1, %v464_v24  ;;  %v546_v27 = vpop.f32.mrf.mxu1 }
  0xd8   : > { %v547_v28 = vadd.f32 %v546_v27, %v476_v23 }
  0xd9   : > { %v825_v29 = vpop.f32.mrf.mxu1 }
  0xda   : > { %550 = vst.msk [vmem:[%s378_s13] sm:$0xff] %vm393_vm1, %v547_v28 }
  0xdc   : > { %v629_v31 = vpop.f32.mrf.mxu0 }
  0xdd   : > { %v630_v32 = vadd.f32 %v629_v31, %v559_v30 }
  0xde   : > { %v836_v33 = vpop.f32.mrf.mxu0 }
  0xdf   : > { %633 = vst.msk [vmem:[%s382_s16] sm:$0xff] %vm393_vm1, %v630_v32 }
  0xe0 PF: > { %s20_s30 = sadd.s32 1, %s853_s30  }
  0xe1   : > { %p17_p4 = scmp.ge.s32.totalorder %s20_s30, 4  }
  0xe3   :  { %19 = sbr.rel (!%p17_p4) target bundleno = 1 (0x1), region = 108 }

// kernel: multi_head_attention.4
= control target key start
LH: loop header
LB: loop body
LE: loop exit
PB: predicated region body
PF: predicated region fallthrough
CT: control target
= control target key end

     0   :  { %s1157_s15 = smov 0   ;;  %s1241_s0 = inlined_call_operand.vmem [shape: f32[2,4,8,8], index: 0, kind: input, shape index: {}]   ;;  %s1242_s1 = inlined_call_operand.vmem [shape: f32[2,4,8,8], index: 1, kind: input, shape index: {}]   ;;  %s1243_s2 = inlined_call_operand.vmem [shape: f32[2,4,8,8], index: 2, kind: input, shape index: {}]   ;;  %s1244_s3 = inlined_call_operand.vmem [shape: f32[2,1,8], index: 3, kind: input, shape index: {}]   ;;  %s1245_s4 = inlined_call_operand.vmem [shape: f32[2,4,8,8], index: 4, kind: output, shape index: {}]  }
   0x1 LB: > { %s1008_s16 = sadd.s32 4294967295, %s1128_s15   ;;  %p1012_p0 = scmp.ge.s32.totalorder %s1128_s15, 1  ;;  %s1128_s15 = sphi %s1157_s15, %s14_s15  }
   0x2   : > { %p190_p1 = scmp.lt.s32.totalorder %s1128_s15, 3 }
   0x4   : > { %p191_p2 = pnand %p1012_p0, %p190_p1 }
   0x5   : > { %p229_p3 = scmp.lt.s32.totalorder (!%p191_p2), %s1008_s16, 1 }
   0x6   : > { %194 = sbr.rel (%p191_p2) target bundleno = 728 (0x2d8), region = 36 }
   0xb   : > { %v1130_v0 = vmov 0.0   ;;  %vm1131_vm0 = vmmov 0   ;;  %s1247_s16 = smov (!%p229_p3, %s1008_s16), 1  ;;  %vm275_vm1 = vcmask 64512  }
   0xc   : > { %1056 = vmatprep.subr.mxu0 %v1130_v0  ;;  %1058 = vmatprep.mubr.msk.f32.mxu0 %vm1131_vm0, %v1130_v0  ;;  %s1174_s17 = sshll.u32 %s1247_s16, 5  ;;  %s246_s26 = scalar_lea.vmem %s1244_s3, %s1247_s16 }
   0xd   : > { %1061 = vmatprep.subr.mxu1 %v1130_v0  ;;  %1063 = vmatprep.mubr.msk.f32.mxu1 %vm1131_vm0, %v1130_v0  ;;  %s238_s20 = scalar_lea.vmem %s1242_s1, %s1174_s17  ;;  %s233_s23 = scalar_lea.vmem %s1241_s0, %s1174_s17  ;;  %v1021_v13 = vld [vmem:[%s246_s26] ss:$0 sm:$0xff] }
   0xe   : > { %v256_v1 = vld [vmem:[%s238_s20] sm:$0xff]  ;;  %v257_v3 = vld [vmem:[%s238_s20 + $0x8] sm:$0xff]  ;;  %v254_v6 = vld [vmem:[%s233_s23 + $0x10] sm:$0xff]  ;;  %s243_s29 = scalar_lea.vmem %s1243_s2, %s1174_s17  ;;  %s251_s6 = scalar_lea.vmem %s1245_s4, %s1174_s17 }
   0xf   : > { %v252_v2 = vld [vmem:[%s233_s23] sm:$0xff]  ;;  %1057 = vmatpush3.xpose.msk.msra.mxu0 %vm275_vm1, %v256_v1  ;;  %1062 = vmatpush3.xpose.msk.msra.mxu1 %vm275_vm1, %v257_v3  ;;  %v253_v5 = vld [vmem:[%s233_s23 + $0x8] sm:$0xff]  ;;  %v258_v7 = vld [vmem:[%s238_s20 + $0x10] sm:$0xff]  ;;  %v266_v11 = vmul.f32 0.35355338, %v254_v6 }
  0x10   : > { %v264_v4 = vmul.f32 0.35355338, %v252_v2  ;;  %1066 = vmatprep.subr.mxu0 %v1130_v0  ;;  %v265_v8 = vmul.f32 0.35355338, %v253_v5  ;;  %1071 = vmatprep.subr.mxu1 %v1130_v0  ;;  %v255_v9 = vld [vmem:[%s233_s23 + $0x18] sm:$0xff]  ;;  %v260_v50 = vld [vmem:[%s243_s29] sm:$0xff] }
  0x11   : > { %v259_v10 = vld [vmem:[%s238_s20 + $0x18] sm:$0xff]  ;;  %v267_v12 = vmul.f32 0.35355338, %v255_v9  ;;  %v261_v51 = vld [vmem:[%s243_s29 + $0x8] sm:$0xff]  ;;  %v262_v58 = vld [vmem:[%s243_s29 + $0x10] sm:$0xff] }
  0x12   : > { %1059 = vmatmul.mubr.msk.f32.vlgmr.msra.gmra.mxu0 %vm275_vm1, %v264_v4  ;;  %1064 = vmatmul.mubr.msk.f32.vlgmr.msra.gmra.mxu1 %vm275_vm1, %v265_v8  ;;  %v263_v62 = vld [vmem:[%s243_s29 + $0x18] sm:$0xff] }
  0x13   : > { %1067 = vmatpush3.xpose.msk.msra.mxu0 %vm275_vm1, %v258_v7  ;;  %1068 = vmatprep.mubr.msk.f32.mxu0 %vm1131_vm0, %v1130_v0 }
  0x14   : > { %1072 = vmatpush3.xpose.msk.msra.mxu1 %vm275_vm1, %v259_v10  ;;  %1073 = vmatprep.mubr.msk.f32.mxu1 %vm1131_vm0, %v1130_v0 }
  0x15   : > { %1076 = vmatprep.subr.mxu0 %v1130_v0  ;;  %1081 = vmatprep.subr.mxu1 %v1130_v0 }
  0x16   : > { %1069 = vmatmul.mubr.msk.f32.vlgmr.msra.gmra.mxu0 %vm275_vm1, %v266_v11 }
  0x17   : > { %1074 = vmatmul.mubr.msk.f32.vlgmr.msra.gmra.mxu1 %vm275_vm1, %v267_v12  ;;  %1078 = vmatprep.mubr.msk.f32.mxu0 %vm1131_vm0, %v1130_v0 }
  0x18   : > { %1083 = vmatprep.mubr.msk.f32.mxu1 %vm1131_vm0, %v1130_v0  ;;  %1077 = vmatpush3.msra.mxu0 %v260_v50 }
  0x19   : > { %1086 = vmatprep.subr.mxu0 %v1130_v0  ;;  %1082 = vmatpush3.msra.mxu1 %v261_v51 }
  0x1a   : > { %1091 = vmatprep.subr.mxu1 %v1130_v0 }
  0xd2   : > { %v348_v14 = vpop.f32.mrf.mxu0  ;;  %v424_v15 = vpop.f32.mrf.mxu1 }
  0xd3   : > { %v349_v16 = vadd.f32 %v1021_v13, %v348_v14  ;;  %v425_v17 = vadd.f32 %v1021_v13, %v424_v15 }
  0xd4   : > { %v1060_v18 = vpop.f32.mrf.mxu0  ;;  %v1065_v19 = vpop.f32.mrf.mxu1 }
  0xd5   : > { %v580_v20 = vsel %vm275_vm1, %v349_v16, -inf  ;;  %v583_v24 = vsel %vm275_vm1, %v425_v17, -inf }
  0xd6   : > { %581 = vmax.xlane.f32.xlu0 %v580_v20  ;;  %v500_v21 = vpop.f32.mrf.mxu0 }
  0xd7   : > { %v501_v22 = vadd.f32 %v1021_v13, %v500_v21  ;;  %v576_v23 = vpop.f32.mrf.mxu1 }
  0xd8   : > { %v1070_v25 = vpop.f32.mrf.mxu0  ;;  %v577_v26 = vadd.f32 %v1021_v13, %v576_v23 }
  0xd9   : > { %v586_v27 = vsel %vm275_vm1, %v501_v22, -inf  ;;  %v1075_v28 = vpop.f32.mrf.mxu1 }
  0xda   : > { %584 = vmax.xlane.f32.xlu0 %v583_v24  ;;  %587 = vmax.xlane.f32.xlu1 %v586_v27  ;;  %v589_v29 = vsel %vm275_vm1, %v577_v26, -inf }
  0xde   : > { %590 = vmax.xlane.f32.xlu1 %v589_v29 }
 0x15f   : > { %v582_v30 = vpop.xlane.xlu0 %581 }
 0x160   : > { %v592_v31 = vsub.f32 %v349_v16, %v582_v30 }
 0x162   : > { %v596_v32 = vmul.f32 1.442695, %v592_v31 }
 0x163   : > { %v585_v33 = vpop.xlane.xlu0 %584  ;;  %v588_v34 = vpop.xlane.xlu1 %587 }
 0x164   : > { %1106 = vpow2.f32 %v596_v32  ;;  %v593_v35 = vsub.f32 %v425_v17, %v585_v33  ;;  %v594_v36 = vsub.f32 %v501_v22, %v588_v34 }
 0x166   : > { %v598_v37 = vmul.f32 1.442695, %v593_v35  ;;  %v600_v38 = vmul.f32 1.442695, %v594_v36 }
 0x167   : > { %v591_v39 = vpop.xlane.xlu1 %590 }
 0x168   : > { %1108 = vpow2.f32 %v598_v37  ;;  %v595_v40 = vsub.f32 %v577_v26, %v591_v39 }
 0x169   : > { %1110 = vpow2.f32 %v600_v38 }
 0x16a   : > { %v602_v41 = vmul.f32 1.442695, %v595_v40 }
 0x16c   : > { %1112 = vpow2.f32 %v602_v41 }
 0x171   : > { %v1107_v42 = vpop.eup %1106 }
 0x172   : > { %v604_v43 = vsel %vm275_vm1, %v1107_v42, 0.0 }
 0x173   : > { %605 = vadd.xlane.f32.xlu0 %v604_v43 }
 0x175   : > { %v1109_v44 = vpop.eup %1108 }
 0x176   : > { %v1111_v45 = vpop.eup %1110  ;;  %v607_v46 = vsel %vm275_vm1, %v1109_v44, 0.0 }
 0x177   : > { %608 = vadd.xlane.f32.xlu1 %v607_v46  ;;  %v610_v47 = vsel %vm275_vm1, %v1111_v45, 0.0 }
 0x178   : > { %611 = vadd.xlane.f32.xlu0 %v610_v47 }
 0x179   : > { %v1113_v48 = vpop.eup %1112 }
 0x17a   : > { %v613_v49 = vsel %vm275_vm1, %v1113_v48, 0.0 }
 0x17b   : > { %614 = vadd.xlane.f32.xlu1 %v613_v49 }
 0x1fc   : > { %v606_v52 = vpop.xlane.xlu0 %605 }
 0x1fd   : > { %1114 = vrcp.f32 %v606_v52 }
 0x200   : > { %v609_v53 = vpop.xlane.xlu1 %608 }
 0x201   : > { %v612_v54 = vpop.xlane.xlu0 %611  ;;  %1116 = vrcp.f32 %v609_v53 }
 0x202   : > { %1118 = vrcp.f32 %v612_v54 }
 0x204   : > { %v615_v55 = vpop.xlane.xlu1 %614 }
 0x205   : > { %1120 = vrcp.f32 %v615_v55 }
 0x20a   : > { %v1115_v56 = vpop.eup %1114 }
 0x20b   : > { %v620_v57 = vmul.f32 %v1115_v56, %v1107_v42 }
 0x20d   : > { %1079 = vmatmul.mubr.msk.f32.vlgmr.msra.gmra.mxu0 %vm275_vm1, %v620_v57 }
 0x20e   : > { %v1117_v59 = vpop.eup %1116  ;;  %1087 = vmatpush3.msra.mxu0 %v262_v58  ;;  %1088 = vmatprep.mubr.msk.f32.mxu0 %vm1131_vm0, %v1130_v0 }
 0x20f   : > { %v1119_v60 = vpop.eup %1118  ;;  %v621_v61 = vmul.f32 %v1117_v59, %v1109_v44 }
 0x210   : > { %v622_v63 = vmul.f32 %v1119_v60, %v1111_v45 }
 0x211   : > { %1084 = vmatmul.mubr.msk.f32.vlgmr.msra.gmra.mxu1 %vm275_vm1, %v621_v61 }
 0x212   : > { %v1121_v1 = vpop.eup %1120  ;;  %1089 = vmatmul.mubr.msk.f32.vlgmr.msra.gmra.mxu0 %vm275_vm1, %v622_v63  ;;  %1092 = vmatpush3.msra.mxu1 %v263_v62 }
 0x213   : > { %1093 = vmatprep.mubr.msk.f32.mxu1 %vm1131_vm0, %v1130_v0  ;;  %v623_v2 = vmul.f32 %v1121_v1, %v1113_v48 }
 0x215   : > { %1094 = vmatmul.mubr.msk.f32.vlgmr.msra.gmra.mxu1 %vm275_vm1, %v623_v2 }
 0x2cd   : > { %v693_v3 = vpop.f32.mrf.mxu0 }
 0x2ce   : > { %916 = vst.msk [vmem:[%s251_s6] sm:$0xff] %vm275_vm1, %v693_v3 }
 0x2cf   : > { %v1080_v4 = vpop.f32.mrf.mxu0 }
 0x2d1   : > { %v766_v5 = vpop.f32.mrf.mxu1 }
 0x2d2   : > { %917 = vst.msk [vmem:[%s251_s6 + $0x8] sm:$0xff] %vm275_vm1, %v766_v5  ;;  %v839_v6 = vpop.f32.mrf.mxu0 }
 0x2d3   : > { %918 = vst.msk [vmem:[%s251_s6 + $0x10] sm:$0xff] %vm275_vm1, %v839_v6  ;;  %v1085_v7 = vpop.f32.mrf.mxu1 }
 0x2d4   : > { %v1090_v8 = vpop.f32.mrf.mxu0 }
 0x2d5   : > { %v912_v0 = vpop.f32.mrf.mxu1 }
 0x2d6   : > { %919 = vst.msk [vmem:[%s251_s6 + $0x18] sm:$0xff] %vm275_vm1, %v912_v0 }
 0x2d7   : > { %v1095_v9 = vpop.f32.mrf.mxu1 }
 0x2d8 PF: > { %s14_s15 = sadd.s32 1, %s1128_s15  }
 0x2d9   : > { %p11_p4 = scmp.ge.s32.totalorder %s14_s15, 4  }
 0x2db   :  { %13 = sbr.rel (!%p11_p4) target bundleno = 1 (0x1), region = 75 }

</bundles_post_ra>
